<compile_context>
chip_gen: v6e
topology: v6e:2x2x1
jax: 0.10.0
libtpu: 0.0.40
codegen_flags: <defaults>
</compile_context>

<pallas_src>
from functools import partial

import numpy as np
import jax
import jax.numpy as jnp
from jax import lax
from jax.experimental import pallas as pl
from jax.experimental.pallas import tpu as pltpu


def lstm_kernel(t_ref,        # scalar prefetch: effective length (SMEM, int32[1])
                xproj_ref,    # (T, B, 3*HP)  per-token fused projections (x@Wx + b)
                wh_ref,       # (HP, 3*HP)    fused hidden->cell/gate weights
                wo_ref,       # (HP, CP)      output linear, lane-padded
                bo_ref,       # (1, CP)
                out_ref):     # (B, CP)
    T, B, F = xproj_ref.shape
    HP = wh_ref.shape[0]                       # 128-lane-aligned hidden segment
    t_eff = t_ref[0]

    wh = wh_ref[...]                           # hoisted: loop-invariant

    def step(t, carry):
        h, hsum = carry
        # pre = [cell | gate_i | gate_o] pre-activations, each HP lanes wide.
        pre = xproj_ref[t] + jnp.dot(h, wh, preferred_element_type=jnp.float32)
        c_new = jnp.tanh(pre[:, 0:HP])                 # tanh(Cell([x, h]))
        g = jax.nn.sigmoid(pre[:, HP:3 * HP])          # gate_i | gate_o, one EUP pass
        # gate_f * c omitted: the torch cell never updates c (returns c_old),
        # so c == 0 for all time and the term is exactly zero.
        h_new = g[:, HP:2 * HP] * jnp.tanh(g[:, 0:HP] * c_new)
        return h_new, hsum + h_new

    zeros = jnp.zeros((B, HP), jnp.float32)
    _, hsum = lax.fori_loop(0, t_eff, step, (zeros, zeros))

    # TODO(synk): torch raises on an all-padding first timestep (cat of empty
    # list); here t_eff == 0 is clamped and the output is just the final bias.
    inv = 1.0 / jnp.maximum(t_eff, 1).astype(jnp.float32)
    mean_h = hsum * inv
    out_ref[...] = (jnp.dot(mean_h, wo_ref[...],
                            preferred_element_type=jnp.float32) + bo_ref[...])


def pack_params(params, lane=128):
    """Fuse gate+cell weights (gate columns replicated over H, each segment
    padded to a full 128-lane vreg), fold the input projection into a per-token
    table, and lane-pad the output linear. Done once, outside the call path."""
    E = params["wcx"].shape[0]
    H = params["wch"].shape[0]
    C = params["wo"].shape[1]
    HP = ((H + lane - 1) // lane) * lane
    CP = ((C + lane - 1) // lane) * lane
    F = 3 * HP

    def fuse(cell_w, gate_w):
        rows = cell_w.shape[0]
        w = jnp.zeros((rows, F), jnp.float32)
        w = w.at[:, 0:H].set(cell_w.astype(jnp.float32))
        w = w.at[:, HP:HP + H].set(
            jnp.tile(gate_w[:, 0:1].astype(jnp.float32), (1, H)))       # gate_i
        w = w.at[:, 2 * HP:2 * HP + H].set(
            jnp.tile(gate_w[:, 2:3].astype(jnp.float32), (1, H)))       # gate_o
        return w

    wx = fuse(params["wcx"], params["wgx"])                              # (E, F)
    wh = jnp.zeros((HP, F), jnp.float32).at[:H, :].set(
        fuse(params["wch"], params["wgh"]))                              # (HP, F)

    b = jnp.zeros((1, F), jnp.float32)
    b = b.at[:, 0:H].set(params["bc"].astype(jnp.float32))
    b = b.at[:, HP:HP + H].set(
        jnp.tile(params["bg"][:, 0:1].astype(jnp.float32), (1, H)))
    b = b.at[:, 2 * HP:2 * HP + H].set(
        jnp.tile(params["bg"][:, 2:3].astype(jnp.float32), (1, H)))

    # Input GEMM removed from the kernel: one (V+1, 3*HP) projection table.
    proj_table = params["embed"].astype(jnp.float32) @ wx + b            # (V+1, F)

    wo = jnp.zeros((HP, CP), jnp.float32).at[:H, :C].set(
        params["wo"].astype(jnp.float32))
    bo = jnp.zeros((1, CP), jnp.float32).at[:, :C].set(
        params["bo"].astype(jnp.float32))

    return {"proj_table": proj_table, "wh": wh, "wo": wo, "bo": bo}


@partial(jax.jit, static_argnames=("max_length", "num_classes"))
def mylstm_forward(x_tokens, packed, max_length, num_classes):
    """x_tokens: (B, max_length) int32 token ids in [0, vocab_size]."""
    B, L = x_tokens.shape
    assert L == max_length
    proj = packed["proj_table"]                  # (V+1, F)
    F = proj.shape[1]
    HP = packed["wh"].shape[0]
    CP = packed["wo"].shape[1]

    # Early-break length, computed on device (no host sync, no recompiles):
    # number of leading timesteps whose token-sum over the batch is nonzero.
    nz = (jnp.sum(x_tokens, axis=0) != 0).astype(jnp.int32)
    t_eff = jnp.sum(jnp.cumprod(nz)).astype(jnp.int32)
    t_arr = t_eff.reshape(1)

    # Gather per-token fused projections (plain-JAX glue), time-major.
    xproj = jnp.transpose(jnp.take(proj, x_tokens, axis=0), (1, 0, 2))   # (T, B, F)

    out = pl.pallas_call(
        lstm_kernel,
        out_shape=jax.ShapeDtypeStruct((B, CP), jnp.float32),
        grid_spec=pltpu.PrefetchScalarGridSpec(
            num_scalar_prefetch=1,
            grid=(1,),
            in_specs=[
                pl.BlockSpec((max_length, B, F), lambda i, s: (0, 0, 0)),  # xproj
                pl.BlockSpec((HP, F), lambda i, s: (0, 0)),                # Wh fused
                pl.BlockSpec((HP, CP), lambda i, s: (0, 0)),               # W_out
                pl.BlockSpec((1, CP), lambda i, s: (0, 0)),                # b_out
            ],
            out_specs=pl.BlockSpec((B, CP), lambda i, s: (0, 0)),
        ),
        compiler_params=pltpu.CompilerParams(
            dimension_semantics=("arbitrary",)),
    )(t_arr, xproj, packed["wh"], packed["wo"], packed["bo"])

    return out[:, :num_classes]


def mylstm_reference(x_tokens, params, max_length):
    """Pure-JAX reference mirroring the torch forward exactly (test-only)."""
    x_np = np.asarray(jax.device_get(x_tokens))
    B = x_tokens.shape[0]
    H = params["wch"].shape[0]
    h = jnp.zeros((B, H), jnp.float32)
    c = jnp.zeros((B, H), jnp.float32)
    hs = []
    for i in range(max_length):
        if int(x_np[:, i].sum()) == 0:
            break
        xt = jnp.take(params["embed"], x_tokens[:, i], axis=0)
        gate = xt @ params["wgx"] + h @ params["wgh"] + params["bg"]
        gi = jax.nn.sigmoid(gate[:, 0:1])
        gf = jax.nn.sigmoid(gate[:, 1:2])
        go = jax.nn.sigmoid(gate[:, 2:3])
        Cn = jnp.tanh(xt @ params["wcx"] + h @ params["wch"] + params["bc"])
        Cn = gi * Cn + gf * c
        h = go * jnp.tanh(Cn)
        hs.append(h)
    mean_h = jnp.mean(jnp.stack(hs, axis=2), axis=2)
    return mean_h @ params["wo"] + params["bo"]


def init_params(key, vocab_size, embedding_dim, hidden_size, num_classes):
    E, H = embedding_dim, hidden_size
    ks = jax.random.split(key, 7)
    fan_gate = 1.0 / np.sqrt(E + H)
    fan_out = 1.0 / np.sqrt(H)
    wg = jax.random.uniform(ks[0], (E + H, 3), jnp.float32, -fan_gate, fan_gate)
    wc = jax.random.uniform(ks[1], (E + H, H), jnp.float32, -fan_gate, fan_gate)
    return {
        "embed": jax.random.normal(ks[2], (vocab_size + 1, E), jnp.float32),
        "wgx": wg[:E], "wgh": wg[E:],
        "bg": jax.random.uniform(ks[3], (1, 3), jnp.float32, -fan_gate, fan_gate),
        "wcx": wc[:E], "wch": wc[E:],
        "bc": jax.random.uniform(ks[4], (1, H), jnp.float32, -fan_gate, fan_gate),
        "wo": jax.random.uniform(ks[5], (H, num_classes), jnp.float32,
                                 -fan_out, fan_out),
        "bo": jax.random.uniform(ks[6], (1, num_classes), jnp.float32,
                                 -fan_out, fan_out),
    }


if __name__ == "__main__":
    # opt: input_size == embedding_dim (required for the torch forward to work)
    batch = 8
    vocab_size = 50
    embedding_dim = input_size = 16
    hidden_size = 32
    num_classes = 4
    max_length = 8

    key = jax.random.PRNGKey(0)
    kp, kx = jax.random.split(key)
    params = init_params(kp, vocab_size, embedding_dim, hidden_size, num_classes)
    packed = pack_params(params)

    # tokens in [1, vocab_size]: full-length sequence (no early break)
    x_tokens = jax.random.randint(kx, (batch, max_length), 1, vocab_size + 1,
                                  dtype=jnp.int32)

    out = jax.block_until_ready(
        mylstm_forward(x_tokens, packed, max_length, num_classes))
    ref = jax.block_until_ready(mylstm_reference(x_tokens, params, max_length))
    np.testing.assert_allclose(np.asarray(out), np.asarray(ref),
                               rtol=1e-5, atol=1e-5)

    # exercise the early-break path (padding from step 5 on) — same compiled fn
    x_pad = x_tokens.at[:, 5:].set(0)
    out_pad = jax.block_until_ready(
        mylstm_forward(x_pad, packed, max_length, num_classes))
    ref_pad = jax.block_until_ready(mylstm_reference(x_pad, params, max_length))
    np.testing.assert_allclose(np.asarray(out_pad), np.asarray(ref_pad),
                               rtol=1e-5, atol=1e-5)

    print("KERNEL_OK")
</pallas_src>

<mosaic_0001>
module attributes {stable_mosaic.version = 11 : i64} {
  func.func @lstm_kernel(%arg0: i32, %arg1: memref<1xi32, #tpu.memory_space<smem>>, %arg2: memref<8x8x384xf32, #tpu.memory_space<vmem>>, %arg3: memref<128x384xf32, #tpu.memory_space<vmem>>, %arg4: memref<128x128xf32, #tpu.memory_space<vmem>>, %arg5: memref<1x128xf32, #tpu.memory_space<vmem>>, %arg6: memref<8x128xf32, #tpu.memory_space<vmem>>) attributes {dimension_semantics = [#tpu.dimension_semantics<arbitrary>], iteration_bounds = array<i64: 1>, scalar_prefetch = 1 : i64, scratch_operands = 0 : i64, tpu.core_type = #tpu.core_type<tc>, window_params = [{pipeline_mode = #tpu.pipeline_mode<synchronous>, transform_indices = @transform_0, window_bounds = array<i64: 8, 8, 384>}, {pipeline_mode = #tpu.pipeline_mode<synchronous>, transform_indices = @transform_1, window_bounds = array<i64: 128, 384>}, {pipeline_mode = #tpu.pipeline_mode<synchronous>, transform_indices = @transform_2, window_bounds = array<i64: 128, 128>}, {pipeline_mode = #tpu.pipeline_mode<synchronous>, transform_indices = @transform_3, window_bounds = array<i64: 1, 128>}, {pipeline_mode = #tpu.pipeline_mode<synchronous>, transform_indices = @transform_4, window_bounds = array<i64: 8, 128>}]} {
    %c0 = arith.constant 0 : index
    %0 = memref.load %arg1[%c0] : memref<1xi32, #tpu.memory_space<smem>>
    %c0_0 = arith.constant 0 : index
    %c0_1 = arith.constant 0 : index
    %1 = vector.load %arg3[%c0_0, %c0_1] : memref<128x384xf32, #tpu.memory_space<vmem>>, vector<128x384xf32>
    %cst = arith.constant 0.000000e+00 : f32
    %2 = vector.broadcast %cst : f32 to vector<8x128xf32>
    %c0_i32 = arith.constant 0 : i32
    %3 = arith.subi %0, %c0_i32 : i32
    %4 = arith.addi %c0_i32, %3 : i32
    %c1_i32 = arith.constant 1 : i32
    %5:2 = scf.for %arg7 = %c0_i32 to %4 step %c1_i32 iter_args(%arg8 = %2, %arg9 = %2) -> (vector<8x128xf32>, vector<8x128xf32>)  : i32 {
      %17 = arith.index_cast %arg7 : i32 to index
      %c0_11 = arith.constant 0 : index
      %c0_12 = arith.constant 0 : index
      %18 = vector.load %arg2[%17, %c0_11, %c0_12] : memref<8x8x384xf32, #tpu.memory_space<vmem>>, vector<1x8x384xf32>
      %19 = vector.shape_cast %18 : vector<1x8x384xf32> to vector<8x384xf32>
      %cst_13 = arith.constant dense<0.000000e+00> : vector<8x384xf32>
      %20 = tpu.matmul %arg8, %1, %cst_13 {dimension_numbers = #tpu.dot_dimension_numbers<[1], [0], [0], [1], [0, 0, 1, 1], [], []>} : vector<8x128xf32>, vector<128x384xf32>, vector<8x384xf32> -> vector<8x384xf32>
      %21 = arith.addf %19, %20 : vector<8x384xf32>
      %22 = vector.extract_strided_slice %21 {offsets = [0, 0], sizes = [8, 128], strides = [1, 1]} : vector<8x384xf32> to vector<8x128xf32>
      %23 = math.tanh %22 : vector<8x128xf32>
      %24 = vector.extract_strided_slice %21 {offsets = [0, 128], sizes = [8, 256], strides = [1, 1]} : vector<8x384xf32> to vector<8x256xf32>
      %25 = arith.negf %24 : vector<8x256xf32>
      %26 = math.exp %25 : vector<8x256xf32>
      %cst_14 = arith.constant 1.000000e+00 : f32
      %27 = vector.broadcast %cst_14 : f32 to vector<8x256xf32>
      %28 = arith.addf %27, %26 : vector<8x256xf32>
      %29 = arith.divf %27, %28 : vector<8x256xf32>
      %30 = vector.extract_strided_slice %29 {offsets = [0, 128], sizes = [8, 128], strides = [1, 1]} : vector<8x256xf32> to vector<8x128xf32>
      %31 = vector.extract_strided_slice %29 {offsets = [0, 0], sizes = [8, 128], strides = [1, 1]} : vector<8x256xf32> to vector<8x128xf32>
      %32 = arith.mulf %31, %23 : vector<8x128xf32>
      %33 = math.tanh %32 : vector<8x128xf32>
      %34 = arith.mulf %30, %33 : vector<8x128xf32>
      %35 = arith.addf %arg9, %34 : vector<8x128xf32>
      scf.yield %34, %35 : vector<8x128xf32>, vector<8x128xf32>
    }
    %c1_i32_2 = arith.constant 1 : i32
    %6 = arith.maxsi %0, %c1_i32_2 : i32
    %7 = arith.sitofp %6 : i32 to f32
    %cst_3 = arith.constant 1.000000e+00 : f32
    %8 = arith.divf %cst_3, %7 : f32
    %9 = vector.broadcast %8 : f32 to vector<8x128xf32>
    %10 = arith.mulf %5#1, %9 : vector<8x128xf32>
    %c0_4 = arith.constant 0 : index
    %c0_5 = arith.constant 0 : index
    %11 = vector.load %arg4[%c0_4, %c0_5] : memref<128x128xf32, #tpu.memory_space<vmem>>, vector<128x128xf32>
    %cst_6 = arith.constant dense<0.000000e+00> : vector<8x128xf32>
    %12 = tpu.matmul %10, %11, %cst_6 {dimension_numbers = #tpu.dot_dimension_numbers<[1], [0], [0], [1], [0, 0, 1, 1], [], []>} : vector<8x128xf32>, vector<128x128xf32>, vector<8x128xf32> -> vector<8x128xf32>
    %c0_7 = arith.constant 0 : index
    %c0_8 = arith.constant 0 : index
    %13 = vector.load %arg5[%c0_7, %c0_8] : memref<1x128xf32, #tpu.memory_space<vmem>>, vector<1x128xf32>
    %14 = vector.broadcast %13 : vector<1x128xf32> to vector<8x128xf32>
    %15 = arith.addf %12, %14 : vector<8x128xf32>
    %c0_9 = arith.constant 0 : index
    %c0_10 = arith.constant 0 : index
    %16 = vector.load %arg6[%c0_9, %c0_10] : memref<8x128xf32, #tpu.memory_space<vmem>>, vector<8x128xf32>
    tpu.vector_store %arg6[%c0_9, %c0_10], %15 {strides = array<i32>} : memref<8x128xf32, #tpu.memory_space<vmem>>, vector<8x128xf32>,
    return
  }
  func.func @transform_0(%arg0: i32, %arg1: memref<1xi32, #tpu.memory_space<smem>>) -> (i32, i32, i32) {
    %c0_i32 = arith.constant 0 : i32
    %c0_i32_0 = arith.constant 0 : i32
    %c0_i32_1 = arith.constant 0 : i32
    %c0_i32_2 = arith.constant 0 : i32
    return %c0_i32, %c0_i32_0, %c0_i32_1 : i32, i32, i32
  }
  func.func @transform_1(%arg0: i32, %arg1: memref<1xi32, #tpu.memory_space<smem>>) -> (i32, i32) {
    %c0_i32 = arith.constant 0 : i32
    %c0_i32_0 = arith.constant 0 : i32
    %c0_i32_1 = arith.constant 0 : i32
    return %c0_i32, %c0_i32_0 : i32, i32
  }
  func.func @transform_2(%arg0: i32, %arg1: memref<1xi32, #tpu.memory_space<smem>>) -> (i32, i32) {
    %c0_i32 = arith.constant 0 : i32
    %c0_i32_0 = arith.constant 0 : i32
    %c0_i32_1 = arith.constant 0 : i32
    return %c0_i32, %c0_i32_0 : i32, i32
  }
  func.func @transform_3(%arg0: i32, %arg1: memref<1xi32, #tpu.memory_space<smem>>) -> (i32, i32) {
    %c0_i32 = arith.constant 0 : i32
    %c0_i32_0 = arith.constant 0 : i32
    %c0_i32_1 = arith.constant 0 : i32
    return %c0_i32, %c0_i32_0 : i32, i32
  }
  func.func @transform_4(%arg0: i32, %arg1: memref<1xi32, #tpu.memory_space<smem>>) -> (i32, i32) {
    %c0_i32 = arith.constant 0 : i32
    %c0_i32_0 = arith.constant 0 : i32
    %c0_i32_1 = arith.constant 0 : i32
    return %c0_i32, %c0_i32_0 : i32, i32
  }
}

</mosaic_0001>

<bundles_post_ra>
// kernel: mylstm_forward.1
= control target key start
LH: loop header
LB: loop body
LE: loop exit
PB: predicated region body
PF: predicated region fallthrough
CT: control target
= control target key end

     0   :  { %v833_v48 = vmov 0.0   ;;  %s996_s0 = inlined_call_operand.<no memory space> [shape: s32[1], index: 0, kind: input, shape index: {}]   ;;  %s997_s1 = inlined_call_operand.vmem [shape: f32[8,8,384], index: 1, kind: input, shape index: {}]   ;;  %s998_s2 = inlined_call_operand.vmem [shape: f32[128,384], index: 2, kind: input, shape index: {}]   ;;  %s999_s3 = inlined_call_operand.vmem [shape: f32[128,128], index: 3, kind: input, shape index: {}]   ;;  %s1000_s4 = inlined_call_operand.vmem [shape: f32[1,128], index: 4, kind: input, shape index: {}]   ;;  %s1001_s5 = inlined_call_operand.vmem [shape: f32[8,128], index: 5, kind: output, shape index: {}]  }
   0x1   :  { %v593_v0 = vld [vmem:[%s998_s2] sm:$0xff]  ;;  %v598_v1 = vld [vmem:[%s998_s2 + $0x8] sm:$0xff]  ;;  %v603_v2 = vld [vmem:[%s998_s2 + $0x10] sm:$0xff]  ;;  %p362_p0 = scmp.le.s32.totalorder %s996_s0, 0 }
   0x2   :  { %1002 = vst [vmem:[#allocation4_spill] sm:$0xff] %v593_v0  ;;  %1003 = vst [vmem:[#allocation5_spill] sm:$0xff] %v598_v1  ;;  %v608_v3 = vld [vmem:[%s998_s2 + $0x18] sm:$0xff]  ;;  %v613_v4 = vld [vmem:[%s998_s2 + $0x20] sm:$0xff]  ;;  %s839_s16 = smov (!%p362_p0), 0  }
   0x3   :  { %1004 = vst [vmem:[#allocation6_spill] sm:$0xff] %v603_v2  ;;  %1005 = vst [vmem:[#allocation7_spill] sm:$0xff] %v608_v3  ;;  %v618_v5 = vld [vmem:[%s998_s2 + $0x28] sm:$0xff]  ;;  %v623_v6 = vld [vmem:[%s998_s2 + $0x30] sm:$0xff] }
   0x4   :  { %v628_v7 = vld [vmem:[%s998_s2 + $0x38] sm:$0xff]  ;;  %v633_v8 = vld [vmem:[%s998_s2 + $0x40] sm:$0xff]  ;;  %v638_v9 = vld [vmem:[%s998_s2 + $0x48] sm:$0xff] }
   0x5   :  { %v643_v10 = vld [vmem:[%s998_s2 + $0x50] sm:$0xff]  ;;  %v648_v11 = vld [vmem:[%s998_s2 + $0x58] sm:$0xff]  ;;  %v653_v12 = vld [vmem:[%s998_s2 + $0x60] sm:$0xff] }
   0x6   :  { %v658_v13 = vld [vmem:[%s998_s2 + $0x68] sm:$0xff]  ;;  %v663_v14 = vld [vmem:[%s998_s2 + $0x70] sm:$0xff]  ;;  %v668_v15 = vld [vmem:[%s998_s2 + $0x78] sm:$0xff] }
   0x7   :  { %v673_v16 = vld [vmem:[%s998_s2 + $0x80] sm:$0xff]  ;;  %v678_v17 = vld [vmem:[%s998_s2 + $0x88] sm:$0xff]  ;;  %v683_v18 = vld [vmem:[%s998_s2 + $0x90] sm:$0xff] }
   0x8   :  { %v688_v19 = vld [vmem:[%s998_s2 + $0x98] sm:$0xff]  ;;  %v693_v20 = vld [vmem:[%s998_s2 + $0xa0] sm:$0xff]  ;;  %v698_v21 = vld [vmem:[%s998_s2 + $0xa8] sm:$0xff] }
   0x9   :  { %v703_v22 = vld [vmem:[%s998_s2 + $0xb0] sm:$0xff]  ;;  %v708_v23 = vld [vmem:[%s998_s2 + $0xb8] sm:$0xff]  ;;  %v713_v24 = vld [vmem:[%s998_s2 + $0xc0] sm:$0xff] }
   0xa   :  { %v718_v25 = vld [vmem:[%s998_s2 + $0xc8] sm:$0xff]  ;;  %v723_v26 = vld [vmem:[%s998_s2 + $0xd0] sm:$0xff]  ;;  %v728_v27 = vld [vmem:[%s998_s2 + $0xd8] sm:$0xff] }
   0xb   :  { %v733_v28 = vld [vmem:[%s998_s2 + $0xe0] sm:$0xff]  ;;  %v738_v29 = vld [vmem:[%s998_s2 + $0xe8] sm:$0xff]  ;;  %v743_v30 = vld [vmem:[%s998_s2 + $0xf0] sm:$0xff] }
   0xc   :  { %v748_v31 = vld [vmem:[%s998_s2 + $0xf8] sm:$0xff]  ;;  %v753_v32 = vld [vmem:[%s998_s2 + $0x100] sm:$0xff]  ;;  %v758_v33 = vld [vmem:[%s998_s2 + $0x108] sm:$0xff] }
   0xd   :  { %v763_v34 = vld [vmem:[%s998_s2 + $0x110] sm:$0xff]  ;;  %v768_v35 = vld [vmem:[%s998_s2 + $0x118] sm:$0xff]  ;;  %v773_v36 = vld [vmem:[%s998_s2 + $0x120] sm:$0xff]  ;;  %355 = sbr.rel (%p362_p0) target bundleno = 301 (0x12d), region = 38 }
   0xe   :  { %v778_v37 = vld [vmem:[%s998_s2 + $0x128] sm:$0xff]  ;;  %v783_v38 = vld [vmem:[%s998_s2 + $0x130] sm:$0xff]  ;;  %v788_v39 = vld [vmem:[%s998_s2 + $0x138] sm:$0xff] }
   0xf   :  { %v793_v40 = vld [vmem:[%s998_s2 + $0x140] sm:$0xff]  ;;  %v798_v41 = vld [vmem:[%s998_s2 + $0x148] sm:$0xff]  ;;  %v803_v42 = vld [vmem:[%s998_s2 + $0x150] sm:$0xff] }
  0x10   :  { %v808_v43 = vld [vmem:[%s998_s2 + $0x158] sm:$0xff]  ;;  %v813_v44 = vld [vmem:[%s998_s2 + $0x160] sm:$0xff]  ;;  %v818_v45 = vld [vmem:[%s998_s2 + $0x168] sm:$0xff] }
  0x11   :  { %v823_v46 = vld [vmem:[%s998_s2 + $0x170] sm:$0xff]  ;;  %v828_v47 = vld [vmem:[%s998_s2 + $0x178] sm:$0xff] }
  0x12   :  { %v835_v49 = vmov 0.0   ;;  %v837_v50 = vmov 0.0  }
  0x13 LB: > { %82 = vmatprep.subr.mxu0 %v823_v46  ;;  %v556_v51 = vmov 0.0   ;;  %v1006_v3 = vld [vmem:[#allocation7_spill] sm:$0xff]  ;;  %v1007_v1 = vld [vmem:[#allocation5_spill] sm:$0xff]  ;;  %v1008_v0 = vld [vmem:[#allocation4_spill] sm:$0xff]  ;;  %vm557_vm0 = vmmov 0   ;;  %s367_s2 = smul.u32 24, %s550_s16  ;;  %s550_s16 = sphi %s839_s16, %s71_s16   ;;  %v546_v50 = vphi %v837_v50, %v241_v50   ;;  %v542_v49 = vphi %v835_v49, %v1010_v49  }
  0x14   : > { %83 = vmatpush1.msra.mxu0 %v818_v45  ;;  %402 = vmatprep.subr.mxu1 %v556_v51  ;;  %v1009_v2 = vld [vmem:[#allocation6_spill] sm:$0xff]  ;;  %s71_s16 = sadd.s32 1, %s550_s16  }
  0x15   : > { %84 = vmatprep.subr.mxu0 %v808_v43  ;;  %403 = vmatpush3.msra.mxu1 %v828_v47  ;;  %s78_s19 = scalar_lea.vmem %s997_s1, %s367_s2  ;;  %p70_p1 = scmp.ge.s32.totalorder %s71_s16, %s996_s0 }
  0x16   : > { %85 = vmatpush1.msra.mxu0 %v803_v42  ;;  %404 = vmatprep.subr.mxu1 %v556_v51  ;;  %v80_v53 = vld [vmem:[%s78_s19 + $0x8] sm:$0xff]  ;;  %v81_v59 = vld [vmem:[%s78_s19 + $0x10] sm:$0xff]  ;;  %v79_v62 = vld [vmem:[%s78_s19] sm:$0xff] }
  0x17   : > { %86 = vmatprep.subr.mxu0 %v793_v40  ;;  %405 = vmatpush3.msra.mxu1 %v813_v44 }
  0x18   : > { %87 = vmatpush1.msra.mxu0 %v788_v39  ;;  %406 = vmatprep.subr.mxu1 %v556_v51 }
  0x19   : > { %88 = vmatprep.subr.mxu0 %v778_v37  ;;  %407 = vmatpush3.msra.mxu1 %v798_v41 }
  0x1a   : > { %89 = vmatpush1.msra.mxu0 %v773_v36  ;;  %408 = vmatprep.subr.mxu1 %v556_v51 }
  0x1b   : > { %90 = vmatprep.subr.mxu0 %v763_v34  ;;  %409 = vmatpush3.msra.mxu1 %v783_v38 }
  0x1c   : > { %91 = vmatpush1.msra.mxu0 %v758_v33  ;;  %410 = vmatprep.subr.mxu1 %v556_v51 }
  0x1d   : > { %92 = vmatprep.subr.mxu0 %v748_v31  ;;  %411 = vmatpush3.msra.mxu1 %v768_v35 }
  0x1e   : > { %93 = vmatpush1.msra.mxu0 %v743_v30  ;;  %412 = vmatprep.subr.mxu1 %v556_v51 }
  0x1f   : > { %94 = vmatprep.subr.mxu0 %v733_v28  ;;  %413 = vmatpush3.msra.mxu1 %v753_v32 }
  0x20   : > { %95 = vmatpush1.msra.mxu0 %v728_v27  ;;  %414 = vmatprep.subr.mxu1 %v556_v51 }
  0x21   : > { %96 = vmatprep.subr.mxu0 %v718_v25  ;;  %415 = vmatpush3.msra.mxu1 %v738_v29 }
  0x22   : > { %97 = vmatpush1.msra.mxu0 %v713_v24  ;;  %416 = vmatprep.subr.mxu1 %v556_v51 }
  0x23   : > { %98 = vmatprep.subr.mxu0 %v703_v22  ;;  %146 = vmatprep.mubr.f32.mxu0 %v556_v51 }
  0x24   : > { %99 = vmatpush1.msra.mxu0 %v698_v21  ;;  %417 = vmatpush3.msra.mxu1 %v723_v26 }
  0x25   : > { %100 = vmatprep.subr.mxu0 %v688_v19  ;;  %418 = vmatprep.subr.mxu1 %v556_v51 }
  0x26   : > { %101 = vmatpush1.msra.mxu0 %v683_v18  ;;  %419 = vmatpush3.msra.mxu1 %v708_v23 }
  0x27   : > { %102 = vmatprep.subr.mxu0 %v673_v16  ;;  %420 = vmatprep.subr.mxu1 %v556_v51 }
  0x28   : > { %103 = vmatpush1.msra.mxu0 %v668_v15  ;;  %421 = vmatpush3.msra.mxu1 %v693_v20 }
  0x29   : > { %104 = vmatprep.subr.mxu0 %v658_v13  ;;  %422 = vmatprep.subr.mxu1 %v556_v51 }
  0x2a   : > { %105 = vmatpush1.msra.mxu0 %v653_v12  ;;  %423 = vmatpush3.msra.mxu1 %v678_v17 }
  0x2b   : > { %106 = vmatprep.subr.mxu0 %v643_v10  ;;  %424 = vmatprep.subr.mxu1 %v556_v51 }
  0x2c   : > { %107 = vmatpush1.msra.mxu0 %v638_v9  ;;  %425 = vmatpush3.msra.mxu1 %v663_v14 }
  0x2d   : > { %108 = vmatprep.subr.mxu0 %v628_v7  ;;  %426 = vmatprep.subr.mxu1 %v556_v51 }
  0x2e   : > { %109 = vmatpush1.msra.mxu0 %v623_v6  ;;  %427 = vmatpush3.msra.mxu1 %v648_v11 }
  0x2f   : > { %110 = vmatprep.subr.mxu0 %v613_v4  ;;  %428 = vmatprep.subr.mxu1 %v556_v51 }
  0x30   : > { %111 = vmatpush1.msra.mxu0 %v1006_v3  ;;  %429 = vmatpush3.msra.mxu1 %v633_v8 }
  0x31   : > { %112 = vmatprep.subr.mxu0 %v1007_v1  ;;  %430 = vmatprep.subr.mxu1 %v556_v51 }
  0x32   : > { %113 = vmatpush1.msra.mxu0 %v1008_v0  ;;  %431 = vmatpush3.msra.mxu1 %v618_v5 }
  0x33   : > { %147 = vmatmul.mubr.f32.vlgmr.msra.gmra.mxu0 %v546_v50  ;;  %432 = vmatprep.subr.mxu1 %v556_v51 }
  0x34   : > { %433 = vmatpush3.msra.mxu1 %v1009_v2  ;;  %434 = vmatprep.mubr.msk.f32.mxu1 %vm557_vm0, %v556_v51 }
  0x35   : > { %435 = vmatmul.mubr.f32.vlgmr.msra.gmra.mxu1 %v546_v50 }
  0xf3   : > { %v148_v52 = vpop.f32.mrf.mxu0 }
  0xf4   : > { %v223_v63 = vadd.f32 %v148_v52, %v79_v62 }
  0xf5   : > { %v150_v54 = vpop.f32.mrf.mxu0  ;;  %v219_v55 = vpop.f32.mrf.mxu1 }
  0xf6   : > { %v224_v56 = vadd.f32 %v150_v54, %v80_v53  ;;  %v225_v60 = vadd.f32 %v219_v55, %v81_v59 }
  0xf7   : > { %v436_v57 = vpop.f32.mrf.mxu1 }
  0xf8   : > { %v364_v58 = vmul.f32 -1.442695, %v224_v56  ;;  %v365_v61 = vmul.f32 -1.442695, %v225_v60 }
  0xfa   : > { %510 = vpow2.f32 %v364_v58 }
  0xfb   : > { %512 = vpow2.f32 %v365_v61 }
  0xfc   : > { %514 = vtanh.f32 %v223_v63 }
 0x107   : > { %v511_v48 = vpop.eup %510 }
 0x108   : > { %v233_v50 = vadd.f32 1.0, %v511_v48  ;;  %v513_v51 = vpop.eup %512 }
 0x109   : > { %v234_v0 = vadd.f32 1.0, %v513_v51  ;;  %v515_v1 = vpop.eup %514 }
 0x10a   : > { %516 = vrcp.f32 %v233_v50 }
 0x10b   : > { %518 = vrcp.f32 %v234_v0 }
 0x117   : > { %v517_v2 = vpop.eup %516 }
 0x118   : > { %v239_v3 = vmul.f32 %v517_v2, %v515_v1  ;;  %v519_v53 = vpop.eup %518 }
 0x11a   : > { %520 = vtanh.f32 %v239_v3 }
 0x127   : > { %v521_v54 = vpop.eup %520 }
 0x128   : > { %v241_v50 = vmul.f32 %v521_v54, %v519_v53   ;;  %73 = sbr.rel (!%p70_p1) target bundleno = 19 (0x13), region = 44 }
 0x12a   : > { %v242_v55 = vadd.f32 %v542_v49, %v241_v50  }
 0x12c   : > { %v1010_v49 = vmov %v242_v55  ;;  %v1011_v48 = vmov (%p70_p1), %v242_v55 }
 0x12d PF:  { %p243_p2 = scmp.gt.s32.totalorder %s996_s0, 1  ;;  %v266_v0 = vld [vmem:[%s999_s3 + $0x78] sm:$0xff]  ;;  %v558_v1 = vmov 0.0   ;;  %v265_v2 = vld [vmem:[%s999_s3 + $0x70] sm:$0xff]  ;;  %vm559_vm1 = vmmov 0   ;;  %v264_v3 = vld [vmem:[%s999_s3 + $0x68] sm:$0xff]  ;;  %v554_v48 = vphi %v833_v48, %v1011_v48  }
 0x12e   :  { %437 = vmatprep.subr.mxu0 %v558_v1  ;;  %469 = vmatprep.mubr.msk.f32.mxu0 %vm559_vm1, %v558_v1  ;;  %v263_v4 = vld [vmem:[%s999_s3 + $0x60] sm:$0xff]  ;;  %v262_v6 = vld [vmem:[%s999_s3 + $0x58] sm:$0xff]  ;;  %v261_v7 = vld [vmem:[%s999_s3 + $0x50] sm:$0xff] }
 0x12f   :  { %s1013_s0 = smov (!%p243_p2, %s996_s0), 1  ;;  %438 = vmatpush3.msra.mxu0 %v266_v0  ;;  %v260_v8 = vld [vmem:[%s999_s3 + $0x48] sm:$0xff]  ;;  %v259_v9 = vld [vmem:[%s999_s3 + $0x40] sm:$0xff]  ;;  %v258_v10 = vld [vmem:[%s999_s3 + $0x38] sm:$0xff] }
 0x130   :  { %439 = vmatprep.subr.mxu0 %v558_v1  ;;  %s245_s6 = scvt.s32.f32 %s1013_s0  ;;  %v257_v11 = vld [vmem:[%s999_s3 + $0x30] sm:$0xff]  ;;  %v256_v12 = vld [vmem:[%s999_s3 + $0x28] sm:$0xff]  ;;  %v255_v14 = vld [vmem:[%s999_s3 + $0x20] sm:$0xff] }
 0x131   :  { %440 = vmatpush3.msra.mxu0 %v265_v2  ;;  %v254_v15 = vld [vmem:[%s999_s3 + $0x18] sm:$0xff]  ;;  %v253_v16 = vld [vmem:[%s999_s3 + $0x10] sm:$0xff]  ;;  %v252_v17 = vld [vmem:[%s999_s3 + $0x8] sm:$0xff] }
 0x132   :  { %441 = vmatprep.subr.mxu0 %v558_v1  ;;  %v246_v5 = vstv %s245_s6  ;;  %v251_v18 = vld [vmem:[%s999_s3] sm:$0xff] }
 0x133   :  { %442 = vmatpush3.msra.mxu0 %v264_v3  ;;  %522 = vrcp.f32 %v246_v5  ;;  %v366_v21 = vld [vmem:[%s1000_s4] ss:$0 sm:$0xff] }
 0x134   :  { %443 = vmatprep.subr.mxu0 %v558_v1 }
 0x135   :  { %444 = vmatpush3.msra.mxu0 %v263_v4 }
 0x136   :  { %445 = vmatprep.subr.mxu0 %v558_v1 }
 0x137   :  { %446 = vmatpush3.msra.mxu0 %v262_v6 }
 0x138   :  { %447 = vmatprep.subr.mxu0 %v558_v1 }
 0x139   :  { %448 = vmatpush3.msra.mxu0 %v261_v7 }
 0x13a   :  { %449 = vmatprep.subr.mxu0 %v558_v1 }
 0x13b   :  { %450 = vmatpush3.msra.mxu0 %v260_v8 }
 0x13c   :  { %451 = vmatprep.subr.mxu0 %v558_v1 }
 0x13d   :  { %452 = vmatpush3.msra.mxu0 %v259_v9 }
 0x13e   :  { %453 = vmatprep.subr.mxu0 %v558_v1 }
 0x13f   :  { %454 = vmatpush3.msra.mxu0 %v258_v10 }
 0x140   :  { %455 = vmatprep.subr.mxu0 %v558_v1  ;;  %v523_v13 = vpop.eup %522 }
 0x141   :  { %456 = vmatpush3.msra.mxu0 %v257_v11  ;;  %472 = vpush %v523_v13 }
 0x142   :  { %457 = vmatprep.subr.mxu0 %v558_v1 }
 0x143   :  { %458 = vmatpush3.msra.mxu0 %v256_v12 }
 0x144   :  { %459 = vmatprep.subr.mxu0 %v558_v1 }
 0x145   :  { %460 = vmatpush3.msra.mxu0 %v255_v14 }
 0x146   :  { %461 = vmatprep.subr.mxu0 %v558_v1 }
 0x147   :  { %462 = vmatpush3.msra.mxu0 %v254_v15 }
 0x148   :  { %463 = vmatprep.subr.mxu0 %v558_v1 }
 0x149   :  { %464 = vmatpush3.msra.mxu0 %v253_v16 }
 0x14a   :  { %465 = vmatprep.subr.mxu0 %v558_v1 }
 0x14b   :  { %466 = vmatpush3.msra.mxu0 %v252_v17 }
 0x14c   :  { %467 = vmatprep.subr.mxu0 %v558_v1 }
 0x14d   :  { %468 = vmatpush3.msra.mxu0 %v251_v18 }
 0x172   :  { %s473_s30 = spop %472 }
 0x173   :  { %v249_v19 = vstv %s473_s30 }
 0x174   :  { %v250_v20 = vmul.f32 %v554_v48, %v249_v19 }
 0x176   :  { %470 = vmatmul.mubr.f32.vlgmr.msra.gmra.mxu0 %v250_v20 }
 0x236   :  { %v340_v22 = vpop.f32.mrf.mxu0 }
 0x237   :  { %v341_v23 = vadd.f32 %v366_v21, %v340_v22 }
 0x238   :  { %v471_v24 = vpop.f32.mrf.mxu0 }
 0x239   :  { %344 = vst [vmem:[%s1001_s5] sm:$0xff] %v341_v23 }

</bundles_post_ra>
